<compile_context>
chip_gen: v6e
topology: v6e:2x2x1
jax: 0.10.0
libtpu: 0.0.40
codegen_flags: <defaults>
</compile_context>

<pallas_src>
import functools

import jax
import jax.numpy as jnp
from jax.experimental import pallas as pl
from jax.experimental.pallas import tpu as pltpu


def _bce_dice_kernel(x_ref, t_ref, out_ref, *, cols, tile_d, tiles_per_core,
                     num_tiles, has_rem, has_ghost, approx_recip):
    c = pl.program_id(0)   # core-split axis ("parallel")
    k = pl.program_id(1)   # streaming reduction axis ("arbitrary")

    # The per-core accumulator is the (3, rows, 128) output block itself,
    # resident across the k axis.  Initialize on each core's first step.
    @pl.when(k == 0)
    def _init():
        out_ref[...] = jnp.zeros_like(out_ref)

    w = min(tile_d, 128)
    n_chunks = tile_d // 128 if tile_d >= 128 else 1

    def _fold(a):
        # Tree-add the 128-lane chunks of a (rows, tile_d) partial down to
        # (rows, 128).  128-aligned static slices are vreg selections and the
        # adds are plain VPU work -> accumulator RMW traffic is per-tile, not
        # per-vreg.
        if n_chunks == 1:
            return a
        parts = [a[:, i * 128:(i + 1) * 128] for i in range(n_chunks)]
        while len(parts) > 1:
            nxt = [parts[i] + parts[i + 1] for i in range(0, len(parts) - 1, 2)]
            if len(parts) % 2:
                nxt.append(parts[-1])
            parts = nxt
        return parts[0]

    def _accumulate(apply_mask):
        x = x_ref[...].astype(jnp.float32)
        t = t_ref[...].astype(jnp.float32)

        # One exp per element, reused by both the stable BCE and the sigmoid.
        e = jnp.exp(-jnp.abs(x))
        log_term = jnp.log1p(e)                        # log(1 + exp(-|x|))
        one_p_e = 1.0 + e
        if approx_recip:
            inv = pl.reciprocal(one_p_e, approx=True)  # EUP, no Newton step
        else:
            inv = 1.0 / one_p_e
        p = jnp.where(x >= 0.0, inv, e * inv)          # sigmoid(x), stable
        bce = jnp.maximum(x, 0.0) - x * t + log_term   # stable BCE-with-logits
        pt = p * t
        pd = p + t

        if apply_mask:
            # Only the globally-last tile pays for the mask; mask is applied
            # BEFORE the lane fold / accumulation.
            g = c * tiles_per_core + k
            col = g * tile_d + jax.lax.broadcasted_iota(jnp.int32, x.shape, 1)
            valid = col < cols
            zero = jnp.zeros_like(x)
            bce = jnp.where(valid, bce, zero)
            pt = jnp.where(valid, pt, zero)
            pd = jnp.where(valid, pd, zero)

        out_ref[0, :, :w] += _fold(bce)
        out_ref[1, :, :w] += _fold(pt)
        out_ref[2, :, :w] += _fold(pd)

    if not (has_rem or has_ghost):
        _accumulate(False)                 # hot path: no mask, no skips
    else:
        g = c * tiles_per_core + k
        if has_rem:
            @pl.when(g == num_tiles - 1)
            def _last_tile():
                _accumulate(True)          # masked remainder tile

            @pl.when(g < num_tiles - 1)
            def _interior_tile():
                _accumulate(False)         # ghost steps (g >= num_tiles) do nothing
        else:
            @pl.when(g < num_tiles)
            def _valid_tile():
                _accumulate(False)         # skip ghost steps of an uneven split


def _vmem_capacity_bytes():
    try:
        return int(pltpu.get_tpu_info().vmem_capacity_bytes)
    except Exception:
        return 64 * 1024 * 1024            # conservative (v7x-sized) fallback


def _choose_fold(n, d):
    """Fold (n, d) -> (n*S, d/S): fill the 8 vreg sublanes for small batches
    while keeping the lane extent a multiple of 128 (no remainder masking)."""
    max_s = min(max(d // 128, 1), 4096)
    fallback = None
    for s in range(1, max_s + 1):
        if d % s:
            continue
        cols = d // s
        if cols % 128:
            continue
        r = n * s
        if r > 1024:                       # keep the (untiled) row dim small
            break
        if r % 8 == 0:
            return s                       # exact sublane fill
        if r >= 8 and fallback is None:
            fallback = s
    return fallback if fallback is not None else 1


def _choose_tile_d(rows, cols, x_item, t_item, vmem_capacity):
    """Lane tile: multiple of 128, ~2 MiB HBM per grid step, double-buffered
    input blocks kept within ~3/8 of this chip's VMEM; prefer tiles dividing
    cols exactly so steady-state tiles never pay the remainder mask."""
    if cols < 128:
        return cols
    bytes_per_lane = rows * (x_item + t_item)
    budget = (vmem_capacity * 3) // 8
    max_by_vmem = budget // max(2 * bytes_per_lane, 1)   # 2 pipeline buffers
    target = (2 << 20) // max(bytes_per_lane, 1)         # ~2 MiB per step
    tile = min(max_by_vmem, max(target, 512))
    tile = max((tile // 128) * 128, 128)
    tile = min(tile, (cols // 128) * 128)
    if cols % 128 == 0 and cols % tile != 0:
        t = tile
        while t > 128 and cols % t != 0:
            t -= 128
        if cols % t == 0 and t >= max(128, tile // 4):
            tile = t
    return int(tile)


def bce_dice_loss_weighted(logits, target, *, fold=None, tile_d=None,
                           approx_reciprocal=True, input_buffers=None):
    """Forward of BCEDiceLossWeighted (size_average=True)."""
    assert logits.shape == target.shape
    n = logits.shape[0]
    d = 1
    for s in logits.shape[1:]:
        d *= int(s)

    if fold is None:
        fold = _choose_fold(n, d)
    assert d % fold == 0
    rows, cols = n * fold, d // fold
    x2 = logits.reshape(rows, cols)        # free reshape of contiguous memory
    t2 = target.reshape(rows, cols)

    x_item = jnp.dtype(x2.dtype).itemsize
    t_item = jnp.dtype(t2.dtype).itemsize
    cap = _vmem_capacity_bytes()
    if tile_d is None:
        tile_d = _choose_tile_d(rows, cols, x_item, t_item, cap)
    else:
        tile_d = int(tile_d)
        if cols >= 128:
            tile_d = max(128, (tile_d // 128) * 128)
            tile_d = min(tile_d, (cols // 128) * 128)
        else:
            tile_d = cols

    num_tiles = int(pl.cdiv(cols, tile_d))
    num_cores = 2 if num_tiles >= 2 else 1     # v7x: split reduction over 2 TCs
    tiles_per_core = int(pl.cdiv(num_tiles, num_cores))
    has_rem = (cols % tile_d) != 0
    has_ghost = (num_cores * tiles_per_core) != num_tiles

    if has_ghost:
        def in_idx(c, k):  # clamp so ghost steps re-read an in-bounds block
            return (0, jnp.minimum(c * tiles_per_core + k, num_tiles - 1))
    else:
        def in_idx(c, k):
            return (0, c * tiles_per_core + k)

    bs_kwargs = {}
    if input_buffers is not None and input_buffers != 2:
        # v5e knob: deeper input pipelining if DMA is exposed.
        bs_kwargs["pipeline_mode"] = pl.Buffered(int(input_buffers))
    in_spec = pl.BlockSpec((rows, tile_d), in_idx, **bs_kwargs)

    kernel = functools.partial(
        _bce_dice_kernel, cols=cols, tile_d=tile_d,
        tiles_per_core=tiles_per_core, num_tiles=num_tiles,
        has_rem=has_rem, has_ghost=has_ghost, approx_recip=approx_reciprocal)

    # Generation-aware VMEM limit: double-buffered inputs + resident per-core
    # (3, rows, 128) accumulator block + headroom.
    in_block = rows * tile_d * (x_item + t_item)
    plan = 2 * in_block + 2 * (3 * rows * 128 * 4) + (8 << 20)
    vmem_limit = int(min(max(plan, 32 << 20), max(cap - (8 << 20), 32 << 20)))

    parts = pl.pallas_call(
        kernel,
        out_shape=jax.ShapeDtypeStruct((num_cores, 3, rows, 128), jnp.float32),
        grid=(num_cores, tiles_per_core),
        in_specs=[in_spec, in_spec],
        out_specs=pl.BlockSpec((None, 3, rows, 128), lambda c, k: (c, 0, 0, 0)),
        compiler_params=pltpu.CompilerParams(
            dimension_semantics=("parallel", "arbitrary"),
            vmem_limit_bytes=vmem_limit),
    )(x2, t2)

    # Tiny, lane-dense epilogue in plain JAX (num_cores * 3 * rows * 128 floats).
    sums = jnp.sum(parts, axis=0)                              # (3, rows, 128)
    bce_mean = jnp.sum(sums[0]) / float(n * d)
    inter = jnp.sum(sums[1].reshape(n, fold * 128), axis=1)    # per-sample sums
    denom = jnp.sum(sums[2].reshape(n, fold * 128), axis=1)
    scores = 2.0 * (inter + 1.0) / (denom + 1.0)
    dice_score = jnp.clip(jnp.sum(scores) / float(n), 0.0, 1.0)  # is_average=True
    return 1.5 * bce_mean + 0.5 * (1.0 - dice_score)


def _reference(logits, target):
    # pure-JAX reference
    n = logits.shape[0]
    x = logits.reshape(n, -1).astype(jnp.float32)
    t = target.reshape(n, -1).astype(jnp.float32)
    bce = jnp.mean(jnp.maximum(x, 0.0) - x * t + jnp.log1p(jnp.exp(-jnp.abs(x))))
    p = jax.nn.sigmoid(x)
    scores = 2.0 * (jnp.sum(p * t, 1) + 1.0) / (jnp.sum(p, 1) + jnp.sum(t, 1) + 1.0)
    dsc = jnp.clip(jnp.mean(scores), 0.0, 1.0)
    return 1.5 * bce + 0.5 * (1.0 - dsc)


if __name__ == "__main__":
    key = jax.random.PRNGKey(0)
    k1, k2 = jax.random.split(key)
    # NCHW: batch=2, channels=4, spatial=16  ->  D = 1024
    logits = jax.random.normal(k1, (2, 4, 16, 16), dtype=jnp.float32)
    target = (jax.random.uniform(k2, (2, 4, 16, 16)) > 0.5).astype(jnp.float32)

    ref = _reference(logits, target)

    # 1) default auto-configured path (fold=4 -> rows=8, cols=256; approx recip)
    loss = bce_dice_loss_weighted(logits, target)
    jax.block_until_ready(loss)
    assert jnp.allclose(loss, ref, atol=5e-3, rtol=5e-3), (loss, ref)

    # 2) exact reciprocal, tight tolerance
    loss2 = bce_dice_loss_weighted(logits, target, approx_reciprocal=False)
    jax.block_until_ready(loss2)
    assert jnp.allclose(loss2, ref, atol=1e-5, rtol=1e-5), (loss2, ref)

    # 3) multi-tile + 2-core split, tile divides cols (no mask, no ghost)
    loss3 = bce_dice_loss_weighted(logits, target, tile_d=128,
                                   approx_reciprocal=False)
    jax.block_until_ready(loss3)
    assert jnp.allclose(loss3, ref, atol=1e-5, rtol=1e-5), (loss3, ref)

    # 4) remainder-masked last tile + ghost step on core 1 (no sublane fold)
    loss4 = bce_dice_loss_weighted(logits, target, fold=1, tile_d=384,
                                   approx_reciprocal=False)
    jax.block_until_ready(loss4)
    assert jnp.allclose(loss4, ref, atol=1e-5, rtol=1e-5), (loss4, ref)

    print("KERNEL_OK")
</pallas_src>

<mosaic_0001>
module attributes {stable_mosaic.version = 11 : i64} {
  func.func @_bce_dice_kernel(%arg0: i32, %arg1: i32, %arg2: memref<8x256xf32, #tpu.memory_space<vmem>>, %arg3: memref<8x256xf32, #tpu.memory_space<vmem>>, %arg4: memref<1x3x8x128xf32, #tpu.memory_space<vmem>>) attributes {dimension_semantics = [#tpu.dimension_semantics<parallel>, #tpu.dimension_semantics<arbitrary>], iteration_bounds = array<i64: 1, 1>, scalar_prefetch = 0 : i64, scratch_operands = 0 : i64, tpu.core_type = #tpu.core_type<tc>, window_params = [{transform_indices = @transform_0, window_bounds = array<i64: 8, 256>}, {transform_indices = @transform_1, window_bounds = array<i64: 8, 256>}, {transform_indices = @transform_2, window_bounds = array<i64: 1, 3, 8, 128>}]} {
    %c0_i32 = arith.constant 0 : i32
    %0 = arith.cmpi eq, %arg1, %c0_i32 : i32
    %1 = arith.extui %0 : i1 to i32
    %c0_i32_0 = arith.constant 0 : i32
    %2 = arith.cmpi ne, %1, %c0_i32_0 : i32
    scf.if %2 {
      %cst_29 = arith.constant 0.000000e+00 : f32
      %51 = vector.broadcast %cst_29 : f32 to vector<3x8x128xf32>
      %c0_30 = arith.constant 0 : index
      %c0_31 = arith.constant 0 : index
      %c0_32 = arith.constant 0 : index
      %c0_33 = arith.constant 0 : index
      %52 = vector.load %arg4[%c0_30, %c0_31, %c0_32, %c0_33] : memref<1x3x8x128xf32, #tpu.memory_space<vmem>>, vector<1x3x8x128xf32>
      %53 = vector.shape_cast %52 : vector<1x3x8x128xf32> to vector<3x8x128xf32>
      %54 = vector.shape_cast %51 : vector<3x8x128xf32> to vector<1x3x8x128xf32>
      tpu.vector_store %arg4[%c0_30, %c0_31, %c0_32, %c0_33], %54 {strides = array<i32>} : memref<1x3x8x128xf32, #tpu.memory_space<vmem>>, vector<1x3x8x128xf32>,
    } else {
    }
    %c0 = arith.constant 0 : index
    %c0_1 = arith.constant 0 : index
    %3 = vector.load %arg2[%c0, %c0_1] : memref<8x256xf32, #tpu.memory_space<vmem>>, vector<8x256xf32>
    %c0_2 = arith.constant 0 : index
    %c0_3 = arith.constant 0 : index
    %4 = vector.load %arg3[%c0_2, %c0_3] : memref<8x256xf32, #tpu.memory_space<vmem>>, vector<8x256xf32>
    %5 = math.absf %3 : vector<8x256xf32>
    %cst = arith.constant 0.000000e+00 : f32
    %6 = vector.broadcast %cst : f32 to vector<8x256xf32>
    %7 = arith.subf %6, %5 : vector<8x256xf32>
    %8 = math.exp %7 : vector<8x256xf32>
    %9 = math.log1p %8 : vector<8x256xf32>
    %cst_4 = arith.constant 1.000000e+00 : f32
    %10 = vector.broadcast %cst_4 : f32 to vector<8x256xf32>
    %11 = arith.addf %10, %8 : vector<8x256xf32>
    %12 = tpu.reciprocal %11 {approx = true} : vector<8x256xf32> -> vector<8x256xf32>
    %cst_5 = arith.constant 0.000000e+00 : f32
    %13 = vector.broadcast %cst_5 : f32 to vector<8x256xf32>
    %14 = arith.cmpf oge, %3, %13 : vector<8x256xf32>
    %15 = arith.mulf %8, %12 : vector<8x256xf32>
    %16 = arith.select %14, %12, %15 : vector<8x256xi1>, vector<8x256xf32>
    %cst_6 = arith.constant 0.000000e+00 : f32
    %17 = vector.broadcast %cst_6 : f32 to vector<8x256xf32>
    %18 = arith.maximumf %3, %17 : vector<8x256xf32>
    %19 = arith.mulf %3, %4 : vector<8x256xf32>
    %20 = arith.subf %18, %19 : vector<8x256xf32>
    %21 = arith.addf %20, %9 : vector<8x256xf32>
    %22 = arith.mulf %16, %4 : vector<8x256xf32>
    %23 = arith.addf %16, %4 : vector<8x256xf32>
    %c0_7 = arith.constant 0 : index
    %c0_8 = arith.constant 0 : index
    %c0_9 = arith.constant 0 : index
    %c0_10 = arith.constant 0 : index
    %24 = vector.load %arg4[%c0_7, %c0_8, %c0_9, %c0_10] : memref<1x3x8x128xf32, #tpu.memory_space<vmem>>, vector<1x1x8x128xf32>
    %25 = vector.shape_cast %24 : vector<1x1x8x128xf32> to vector<8x128xf32>
    %26 = vector.extract_strided_slice %21 {offsets = [0, 0], sizes = [8, 128], strides = [1, 1]} : vector<8x256xf32> to vector<8x128xf32>
    %27 = vector.extract_strided_slice %21 {offsets = [0, 128], sizes = [8, 128], strides = [1, 1]} : vector<8x256xf32> to vector<8x128xf32>
    %28 = arith.addf %26, %27 : vector<8x128xf32>
    %29 = arith.addf %25, %28 : vector<8x128xf32>
    %c0_11 = arith.constant 0 : index
    %c0_12 = arith.constant 0 : index
    %c0_13 = arith.constant 0 : index
    %c0_14 = arith.constant 0 : index
    %30 = vector.load %arg4[%c0_11, %c0_12, %c0_13, %c0_14] : memref<1x3x8x128xf32, #tpu.memory_space<vmem>>, vector<1x1x8x128xf32>
    %31 = vector.shape_cast %30 : vector<1x1x8x128xf32> to vector<8x128xf32>
    %32 = vector.shape_cast %29 : vector<8x128xf32> to vector<1x1x8x128xf32>
    tpu.vector_store %arg4[%c0_11, %c0_12, %c0_13, %c0_14], %32 {strides = array<i32>} : memref<1x3x8x128xf32, #tpu.memory_space<vmem>>, vector<1x1x8x128xf32>,
    %c0_15 = arith.constant 0 : index
    %c1 = arith.constant 1 : index
    %c0_16 = arith.constant 0 : index
    %c0_17 = arith.constant 0 : index
    %33 = vector.load %arg4[%c0_15, %c1, %c0_16, %c0_17] : memref<1x3x8x128xf32, #tpu.memory_space<vmem>>, vector<1x1x8x128xf32>
    %34 = vector.shape_cast %33 : vector<1x1x8x128xf32> to vector<8x128xf32>
    %35 = vector.extract_strided_slice %22 {offsets = [0, 0], sizes = [8, 128], strides = [1, 1]} : vector<8x256xf32> to vector<8x128xf32>
    %36 = vector.extract_strided_slice %22 {offsets = [0, 128], sizes = [8, 128], strides = [1, 1]} : vector<8x256xf32> to vector<8x128xf32>
    %37 = arith.addf %35, %36 : vector<8x128xf32>
    %38 = arith.addf %34, %37 : vector<8x128xf32>
    %c0_18 = arith.constant 0 : index
    %c1_19 = arith.constant 1 : index
    %c0_20 = arith.constant 0 : index
    %c0_21 = arith.constant 0 : index
    %39 = vector.load %arg4[%c0_18, %c1_19, %c0_20, %c0_21] : memref<1x3x8x128xf32, #tpu.memory_space<vmem>>, vector<1x1x8x128xf32>
    %40 = vector.shape_cast %39 : vector<1x1x8x128xf32> to vector<8x128xf32>
    %41 = vector.shape_cast %38 : vector<8x128xf32> to vector<1x1x8x128xf32>
    tpu.vector_store %arg4[%c0_18, %c1_19, %c0_20, %c0_21], %41 {strides = array<i32>} : memref<1x3x8x128xf32, #tpu.memory_space<vmem>>, vector<1x1x8x128xf32>,
    %c0_22 = arith.constant 0 : index
    %c2 = arith.constant 2 : index
    %c0_23 = arith.constant 0 : index
    %c0_24 = arith.constant 0 : index
    %42 = vector.load %arg4[%c0_22, %c2, %c0_23, %c0_24] : memref<1x3x8x128xf32, #tpu.memory_space<vmem>>, vector<1x1x8x128xf32>
    %43 = vector.shape_cast %42 : vector<1x1x8x128xf32> to vector<8x128xf32>
    %44 = vector.extract_strided_slice %23 {offsets = [0, 0], sizes = [8, 128], strides = [1, 1]} : vector<8x256xf32> to vector<8x128xf32>
    %45 = vector.extract_strided_slice %23 {offsets = [0, 128], sizes = [8, 128], strides = [1, 1]} : vector<8x256xf32> to vector<8x128xf32>
    %46 = arith.addf %44, %45 : vector<8x128xf32>
    %47 = arith.addf %43, %46 : vector<8x128xf32>
    %c0_25 = arith.constant 0 : index
    %c2_26 = arith.constant 2 : index
    %c0_27 = arith.constant 0 : index
    %c0_28 = arith.constant 0 : index
    %48 = vector.load %arg4[%c0_25, %c2_26, %c0_27, %c0_28] : memref<1x3x8x128xf32, #tpu.memory_space<vmem>>, vector<1x1x8x128xf32>
    %49 = vector.shape_cast %48 : vector<1x1x8x128xf32> to vector<8x128xf32>
    %50 = vector.shape_cast %47 : vector<8x128xf32> to vector<1x1x8x128xf32>
    tpu.vector_store %arg4[%c0_25, %c2_26, %c0_27, %c0_28], %50 {strides = array<i32>} : memref<1x3x8x128xf32, #tpu.memory_space<vmem>>, vector<1x1x8x128xf32>,
    return
  }
  func.func @transform_0(%arg0: i32, %arg1: i32) -> (i32, i32) {
    %c1_i32 = arith.constant 1 : i32
    %0 = arith.muli %arg0, %c1_i32 : i32
    %1 = arith.addi %0, %arg1 : i32
    %c0_i32 = arith.constant 0 : i32
    %c0_i32_0 = arith.constant 0 : i32
    return %c0_i32, %1 : i32, i32
  }
  func.func @transform_1(%arg0: i32, %arg1: i32) -> (i32, i32) {
    %c1_i32 = arith.constant 1 : i32
    %0 = arith.muli %arg0, %c1_i32 : i32
    %1 = arith.addi %0, %arg1 : i32
    %c0_i32 = arith.constant 0 : i32
    %c0_i32_0 = arith.constant 0 : i32
    return %c0_i32, %1 : i32, i32
  }
  func.func @transform_2(%arg0: i32, %arg1: i32) -> (i32, i32, i32, i32) {
    %c0_i32 = arith.constant 0 : i32
    %c0_i32_0 = arith.constant 0 : i32
    %c0_i32_1 = arith.constant 0 : i32
    %c0_i32_2 = arith.constant 0 : i32
    return %arg0, %c0_i32, %c0_i32_0, %c0_i32_1 : i32, i32, i32, i32
  }
}

</mosaic_0001>

<bundles_post_ra>
// kernel: tpu_custom_call.1
= control target key start
LH: loop header
LB: loop body
LE: loop exit
PB: predicated region body
PF: predicated region fallthrough
CT: control target
= control target key end

     0   :  { %7 = vsyncpa [#allocation3], 0  ;;  %s252_s0 = inlined_call_operand.hbm [shape: f32[8,256], index: 0, kind: input, shape index: {}]   ;;  %s253_s1 = inlined_call_operand.hbm [shape: f32[8,256], index: 1, kind: input, shape index: {}]   ;;  %s254_s2 = inlined_call_operand.hbm [shape: f32[1,3,8,128], index: 2, kind: output, shape index: {}]  }
   0x1   :  { %8 = vsyncpa [#allocation6], 0 }
   0x2   :  { %9 = vsyncpa [#allocation4], 0  ;;  %s223_s9 = smov [#allocation2]   ;;  %s224_s11 = smov [#allocation5]  }
   0x3   :  { %s20_s10 = sshll.u32 %s223_s9, 4  ;;  %s34_s12 = sshll.u32 %s224_s11, 4  ;;  %s21_s10 = int_to_ptr.vmem [resolvable:$true] %s20_s10  ;;  %s35_s12 = int_to_ptr.vmem [resolvable:$true] %s34_s12 }
   0x4   :  { %s165_s13 = scalar_lea.vmem %s21_s10, 256  ;;  %p170_p1 = scmp.lt.s32.totalorder %s21_s10, %s21_s10 }
   0x5   :  { %p166_p0 = scmp.ne.s32.totalorder %s21_s10, %s165_s13  ;;  %p171_p2 = scmp.lt.s32.totalorder %s165_s13, %s165_s13 }
   0x7   :  { %p172_p3 = por %p171_p2, %p170_p1 }
   0x9   :  { %p173_p4 = pnand %p172_p3, %p166_p0 }
   0xb   :  { %176 = shalt.err (!%p173_p4)
}
   0xc   :  { %23 = dma.hbm_to_vmem [thread:$0]  %s252_s0, 256, %s21_s10, [#allocation3]  }
   0xd   :  { %s185_s16 = scalar_lea.vmem %s35_s12, 256  ;;  %p190_p6 = scmp.lt.s32.totalorder %s35_s12, %s35_s12 }
   0xe   :  { %p186_p5 = scmp.ne.s32.totalorder %s35_s12, %s185_s16  ;;  %p191_p7 = scmp.lt.s32.totalorder %s185_s16, %s185_s16 }
  0x10   :  { %p192_p8 = por %p191_p7, %p190_p6 }
  0x12   :  { %p193_p9 = pnand %p192_p8, %p186_p5 }
  0x14   :  { %196 = shalt.err (!%p193_p9)
}
  0x15   :  { %37 = dma.hbm_to_vmem [thread:$0]  %s253_s1, 256, %s35_s12, [#allocation6]  }
  0x16   :  { %217 = dma.done.wait [#allocation3], 256  }
  0x17   :  { %218 = vsyncadd [#allocation3], 4294967040 }
  0x18   :  { %219 = dma.done.wait [#allocation6], 256  }
  0x19   :  { %220 = vsyncadd [#allocation6], 4294967040  ;;  %v55_v0 = vld [vmem:[#allocation2] sm:$0xff]  ;;  %v56_v1 = vld [vmem:[#allocation2 + $0x8] sm:$0xff]  ;;  %s225_s0 = smov [#allocation7]  }
  0x1a   :  { %v59_v2 = vand.u32 2147483647, %v55_v0  ;;  %v60_v3 = vand.u32 2147483647, %v56_v1  ;;  %v57_v14 = vld [vmem:[#allocation5] sm:$0xff]  ;;  %v58_v15 = vld [vmem:[#allocation5 + $0x8] sm:$0xff] }
  0x1b   :  { %v95_v19 = vmax.f32 %v55_v0, 0.0  ;;  %v97_v20 = vmul.f32 %v57_v14, %v55_v0  ;;  %v96_v22 = vmax.f32 %v56_v1, 0.0  ;;  %v98_v23 = vmul.f32 %v58_v15, %v56_v1  ;;  %s126_s1 = sshll.u32 %s225_s0, 4  ;;  %s127_s1 = int_to_ptr.vmem [resolvable:$true] %s126_s1 }
  0x1c   :  { %v61_v4 = vsub.f32 0.0, %v59_v2  ;;  %v62_v5 = vsub.f32 0.0, %v60_v3  ;;  %vm89_vm2 = vcmp.ge.f32.partialorder %v55_v0, 0.0  ;;  %vm90_vm3 = vcmp.ge.f32.partialorder %v56_v1, 0.0  ;;  %s197_s19 = scalar_lea.vmem %s127_s1, 384  ;;  %p202_p11 = scmp.lt.s32.totalorder %s127_s1, %s127_s1 }
  0x1d   :  { %v99_v27 = vsub.f32 %v95_v19, %v97_v20  ;;  %v100_v30 = vsub.f32 %v96_v22, %v98_v23  ;;  %p198_p10 = scmp.ne.s32.totalorder %s127_s1, %s197_s19  ;;  %p203_p12 = scmp.lt.s32.totalorder %s197_s19, %s197_s19 }
  0x1e   :  { %v63_v6 = vmul.f32 1.442695, %v61_v4  ;;  %v65_v7 = vmul.f32 1.442695, %v62_v5 }
  0x1f   :  { %p204_p13 = por %p203_p12, %p202_p11 }
  0x20   :  { %145 = vpow2.f32 %v63_v6 }
  0x21   :  { %147 = vpow2.f32 %v65_v7  ;;  %p205_p0 = pnand %p204_p13, %p198_p10 }
  0x2d   :  { %v146_v8 = vpop.eup %145 }
  0x2e   :  { %v148_v9 = vpop.eup %147  ;;  %v67_v10 = vadd.f32 1.0, %v146_v8  ;;  %v70_v12 = vmul.f32 -0.5, %v146_v8  ;;  %v73_v17 = vand.u32 2147483647, %v146_v8 }
  0x2f   :  { %v76_v11 = vadd.f32 1.0, %v148_v9  ;;  %v79_v13 = vmul.f32 -0.5, %v148_v9  ;;  %v82_v21 = vand.u32 2147483647, %v148_v9 }
  0x30   :  { %149 = vlog2.f32 %v67_v10  ;;  %v71_v16 = vadd.f32 1.0, %v70_v12  ;;  %vm74_vm0 = vcmp.lt.f32.partialorder %v73_v17, 0.0004427343 }
  0x31   :  { %151 = vlog2.f32 %v76_v11  ;;  %v80_v18 = vadd.f32 1.0, %v79_v13  ;;  %vm83_vm1 = vcmp.lt.f32.partialorder %v82_v21, 0.0004427343 }
  0x32   :  { %153 = vrcp.f32 %v67_v10  ;;  %v72_v24 = vmul.f32 %v146_v8, %v71_v16 }
  0x33   :  { %155 = vrcp.f32 %v76_v11  ;;  %v81_v26 = vmul.f32 %v148_v9, %v80_v18 }
  0x3d   :  { %v150_v25 = vpop.eup %149 }
  0x3e   :  { %v152_v28 = vpop.eup %151  ;;  %v69_v29 = vmul.f32 0.6931472, %v150_v25 }
  0x3f   :  { %v154_v31 = vpop.eup %153  ;;  %v78_v32 = vmul.f32 0.6931472, %v152_v28 }
  0x40   :  { %v156_v33 = vpop.eup %155  ;;  %v75_v34 = vsel %vm74_vm0, %v72_v24, %v69_v29  ;;  %v91_v35 = vmul.f32 %v154_v31, %v146_v8 }
  0x41   :  { %v84_v36 = vsel %vm83_vm1, %v81_v26, %v78_v32  ;;  %v101_v37 = vadd.f32 %v99_v27, %v75_v34  ;;  %v92_v38 = vmul.f32 %v156_v33, %v148_v9 }
  0x42   :  { %v102_v39 = vadd.f32 %v100_v30, %v84_v36  ;;  %v93_v40 = vsel %vm89_vm2, %v154_v31, %v91_v35 }
  0x43   :  { %v94_v41 = vsel %vm90_vm3, %v156_v33, %v92_v38  ;;  %v103_v42 = vmul.f32 %v93_v40, %v57_v14  ;;  %v105_v43 = vadd.f32 %v93_v40, %v57_v14 }
  0x44   :  { %v108_v44 = vadd.f32 %v102_v39, %v101_v37  ;;  %v104_v45 = vmul.f32 %v94_v41, %v58_v15  ;;  %v106_v46 = vadd.f32 %v94_v41, %v58_v15 }
  0x46   :  { %v113_v47 = vadd.f32 %v104_v45, %v103_v42  ;;  %v118_v48 = vadd.f32 %v106_v46, %v105_v43  ;;  %110 = vst [vmem:[#allocation7] sm:$0xff] %v108_v44 }
  0x48   :  { %115 = vst [vmem:[#allocation7 + $0x8] sm:$0xff] %v113_v47  ;;  %120 = vst [vmem:[#allocation7 + $0x10] sm:$0xff] %v118_v48 }
  0x49   :  { %208 = shalt.err (!%p205_p0)
}
  0x4a   :  { %s226_s20 = smov 128   ;;  %s227_s21 = smov 8  }
  0x4b   :  { %132 = dma.vmem_to_hbm [thread:$0]  %s127_s1, 384, %s254_s2, [#allocation4], %s226_s20, %s226_s20, %s227_s21  }
  0x4c   :  { %221 = dma.done.wait [#allocation4], 384  }
  0x4d   :  { %222 = vsyncadd [#allocation4], 4294966912 }
  0x4e   :  { %136 = vsyncpa [#allocation3], 1 }
  0x4f   :  { %137 = vsyncpa [#allocation6], 1 }
  0x50   :  { %138 = vsyncpa [#allocation4], 1 }

</bundles_post_ra>
